<compile_context>
chip_gen: v7x
topology: tpu7x:2x2x1
jax: 0.10.0
libtpu: 0.0.40
codegen_flags: <defaults>
</compile_context>

<pallas_src>
import functools

import jax
import jax.numpy as jnp
from jax import lax
from jax.experimental import pallas as pl
from jax.experimental.pallas import tpu as pltpu

_BN_EPS = 1e-5


# ----------------------------------------------------------------------------
# Kernel 1: channel-attention apply + per-pixel channel stats
# ----------------------------------------------------------------------------
def _ca_apply_stats_kernel(x_ref, ca_ref, x1_ref, mean_ref, max_ref):
    # x block: (1, T, C)  (spatial tile on sublanes, channels on lanes)
    x1 = x_ref[0] * ca_ref[0]                        # (T, C) * (1, C)
    x1_ref[0] = x1
    c = x1.shape[-1]
    mean_ref[0] = jnp.sum(x1, axis=-1, keepdims=True) * (1.0 / c)
    max_ref[0] = jnp.max(x1, axis=-1, keepdims=True)


def _hw_tile(hw):
    for t in (2048, 1024, 512, 256, 128):
        if hw >= t and hw % t == 0:
            return t
    return hw


def ca_apply_stats(x_flat, ca):
    """x_flat: (B, HW, C) f32, ca: (B, C) f32 -> (x1, chan_mean, chan_max)."""
    B, HW, C = x_flat.shape
    T = _hw_tile(HW)
    ca3 = ca.reshape(B, 1, C)
    return pl.pallas_call(
        _ca_apply_stats_kernel,
        out_shape=(jax.ShapeDtypeStruct((B, HW, C), x_flat.dtype),
                   jax.ShapeDtypeStruct((B, HW, 1), jnp.float32),
                   jax.ShapeDtypeStruct((B, HW, 1), jnp.float32)),
        grid_spec=pltpu.PrefetchScalarGridSpec(
            num_scalar_prefetch=0,
            grid=(B, HW // T),
            in_specs=[pl.BlockSpec((1, T, C), lambda b, t: (b, t, 0)),
                      pl.BlockSpec((1, 1, C), lambda b, t: (b, 0, 0))],
            out_specs=[pl.BlockSpec((1, T, C), lambda b, t: (b, t, 0)),
                       pl.BlockSpec((1, T, 1), lambda b, t: (b, t, 0)),
                       pl.BlockSpec((1, T, 1), lambda b, t: (b, t, 0))]),
        compiler_params=pltpu.CompilerParams(
            dimension_semantics=("parallel", "parallel")),
    )(x_flat, ca3)


# ----------------------------------------------------------------------------
# Kernel 2: spatial-attention apply + depthwise 3x3 + folded BN + ReLU
# ----------------------------------------------------------------------------
def _sa_dw_refine_kernel(x_ref, sa_ref, w_ref, s_ref, b_ref, o_ref):
    # x block:  (1, H+2, W+2, C)  zero-padded, channels on lanes
    # sa block: (1, H+2, W+2, 1)  zero-padded spatial-attention map
    # w block:  (9, 1, C)  depthwise taps, s/b: (1, C) folded BN scale/bias
    H = o_ref.shape[1]
    W = o_ref.shape[2]
    acc = None
    t = 0
    for dy in range(3):
        for dx in range(3):
            xs = x_ref[0, dy:dy + H, dx:dx + W, :]       # (H, W, C)
            ss = sa_ref[0, dy:dy + H, dx:dx + W, :]      # (H, W, 1)
            term = (xs * ss) * w_ref[t]                  # (1, C) lane vector
            acc = term if acc is None else acc + term
            t += 1
    y = acc * s_ref[...] + b_ref[...]
    o_ref[0] = jnp.maximum(y, 0.0)


def sa_dw_refine(x1p, sap, w9, scale, bias):
    """x1p: (B, H+2, W+2, C) zero-padded, sap: (B, H+2, W+2, 1)."""
    B, Hp, Wp, C = x1p.shape
    H, W = Hp - 2, Wp - 2
    return pl.pallas_call(
        _sa_dw_refine_kernel,
        out_shape=jax.ShapeDtypeStruct((B, H, W, C), x1p.dtype),
        grid_spec=pltpu.PrefetchScalarGridSpec(
            num_scalar_prefetch=0,
            grid=(B,),
            in_specs=[pl.BlockSpec((1, Hp, Wp, C), lambda b: (b, 0, 0, 0)),
                      pl.BlockSpec((1, Hp, Wp, 1), lambda b: (b, 0, 0, 0)),
                      pl.BlockSpec((9, 1, C), lambda b: (0, 0, 0)),
                      pl.BlockSpec((1, C), lambda b: (0, 0)),
                      pl.BlockSpec((1, C), lambda b: (0, 0))],
            out_specs=pl.BlockSpec((1, H, W, C), lambda b: (b, 0, 0, 0))),
        compiler_params=pltpu.CompilerParams(
            dimension_semantics=("parallel",)),
    )(x1p, sap, w9, scale.reshape(1, C), bias.reshape(1, C))


# ----------------------------------------------------------------------------
# Kernel 3: generic fused matmul + folded BN + activation (heads' convs)
# ----------------------------------------------------------------------------
def _matmul_bn_act_kernel(x_ref, w_ref, s_ref, b_ref, o_ref, *, act):
    y = jnp.dot(x_ref[...], w_ref[...], preferred_element_type=jnp.float32)
    y = y * s_ref[...] + b_ref[...]
    if act == "silu":
        y = y * (1.0 / (1.0 + jnp.exp(-y)))
    o_ref[...] = y.astype(o_ref.dtype)


_MATMUL_KERNELS = {
    "silu": functools.partial(_matmul_bn_act_kernel, act="silu"),
    "none": functools.partial(_matmul_bn_act_kernel, act="none"),
}


def _row_tile(m):
    for t in (512, 256, 128, 64, 32, 16, 8):
        if m % t == 0:
            return t
    return m


def matmul_scale_bias_act(x, w, scale, bias, act):
    """y = act((x @ w) * scale + bias); x: (M, K), w: (K, N)."""
    M, K = x.shape
    N = w.shape[1]
    tm = _row_tile(M)
    return pl.pallas_call(
        _MATMUL_KERNELS[act],
        out_shape=jax.ShapeDtypeStruct((M, N), x.dtype),
        grid_spec=pltpu.PrefetchScalarGridSpec(
            num_scalar_prefetch=0,
            grid=(M // tm,),
            in_specs=[pl.BlockSpec((tm, K), lambda i: (i, 0)),
                      pl.BlockSpec((K, N), lambda i: (0, 0)),
                      pl.BlockSpec((1, N), lambda i: (0, 0)),
                      pl.BlockSpec((1, N), lambda i: (0, 0))],
            out_specs=pl.BlockSpec((tm, N), lambda i: (i, 0))),
        compiler_params=pltpu.CompilerParams(
            dimension_semantics=("parallel",)),
    )(x, w, scale.reshape(1, N), bias.reshape(1, N))


# ----------------------------------------------------------------------------
# Wrapper helpers
# ----------------------------------------------------------------------------
def _fold_bn(bn, conv_bias=None):
    scale = bn["gamma"] / jnp.sqrt(bn["var"] + _BN_EPS)
    bias = bn["beta"] - bn["mean"] * scale
    if conv_bias is not None:
        bias = bias + conv_bias * scale
    return scale, bias


def _im2col3x3(x):
    """NHWC (B,H,W,C) -> patches (B*H*W, 9*C), tap-major channel ordering."""
    B, H, W, C = x.shape
    xp = jnp.pad(x, ((0, 0), (1, 1), (1, 1), (0, 0)))
    cols = [xp[:, dy:dy + H, dx:dx + W, :] for dy in range(3) for dx in range(3)]
    return jnp.concatenate(cols, axis=-1).reshape(B * H * W, 9 * C)


def detect_advanced_pallas(xs, params, nc, reg_max):
    """xs: list of NCHW feature maps.  Returns (reg (B,4*reg_max,A), cls (B,nc,A))."""
    HI = lax.Precision.HIGHEST
    regs, clss = [], []
    for x_nchw, p in zip(xs, params):
        B, C, H, W = x_nchw.shape
        x = jnp.transpose(x_nchw, (0, 2, 3, 1))                   # NHWC

        # ---- CBAM channel attention: coefficient phase (tiny, plain JAX) ----
        cr = p["ca_w1"].shape[0]
        w1 = p["ca_w1"].reshape(cr, C)
        w2 = p["ca_w2"].reshape(C, cr)
        pooled_avg = x.mean(axis=(1, 2))                          # (B, C)
        pooled_max = x.max(axis=(1, 2))

        def ca_mlp(v):
            h = jnp.maximum(jnp.matmul(v, w1.T, precision=HI), 0.0)
            return jnp.matmul(h, w2.T, precision=HI)

        ca = jax.nn.sigmoid(ca_mlp(pooled_avg) + ca_mlp(pooled_max))   # (B, C)

        # ---- Pallas: apply channel attention + per-pixel channel stats ----
        x1, s_mean, s_max = ca_apply_stats(x.reshape(B, H * W, C), ca)

        # ---- spatial attention logits: tiny 2->1 channel 7x7 conv (JAX) ----
        stats = jnp.concatenate([s_mean, s_max], axis=-1).reshape(B, H, W, 2)
        w_sa = jnp.transpose(p["sa_w"], (2, 3, 1, 0))             # (7,7,2,1) HWIO
        sa = jax.nn.sigmoid(lax.conv_general_dilated(
            stats, w_sa, (1, 1), [(3, 3), (3, 3)],
            dimension_numbers=("NHWC", "HWIO", "NHWC"), precision=HI))

        # ---- Pallas: SA apply + depthwise 3x3 + folded BN + ReLU ----
        x1p = jnp.pad(x1.reshape(B, H, W, C), ((0, 0), (1, 1), (1, 1), (0, 0)))
        sap = jnp.pad(sa, ((0, 0), (1, 1), (1, 1), (0, 0)))
        dw_w9 = jnp.transpose(p["dw_w"][:, 0], (1, 2, 0)).reshape(9, 1, C)
        dw_s, dw_b = _fold_bn(p["dw_bn"], conv_bias=p["dw_b"])
        feat = sa_dw_refine(x1p, sap, dw_w9, dw_s, dw_b)          # (B, H, W, C)

        # ---- detection heads: im2col + fused matmul kernels ----
        def conv3x3_bn_silu(t, w, bn):
            Bc, Hc, Wc, Cc = t.shape
            co = w.shape[0]
            patches = _im2col3x3(t)
            w9 = jnp.transpose(w, (2, 3, 1, 0)).reshape(9 * Cc, co)
            s, b = _fold_bn(bn)
            y = matmul_scale_bias_act(patches, w9, s, b, act="silu")
            return y.reshape(Bc, Hc, Wc, co)

        def conv1x1_bias(t, w, b):
            Bc, Hc, Wc, Cc = t.shape
            co = w.shape[0]
            w2d = w.reshape(co, Cc).T
            y = matmul_scale_bias_act(t.reshape(Bc * Hc * Wc, Cc), w2d,
                                      jnp.ones((co,), jnp.float32), b, act="none")
            return y.reshape(Bc, Hc, Wc, co)

        r = conv3x3_bn_silu(feat, p["reg1_w"], p["reg1_bn"])
        r = conv3x3_bn_silu(r, p["reg2_w"], p["reg2_bn"])
        r = conv1x1_bias(r, p["reg3_w"], p["reg3_b"])
        c_ = conv3x3_bn_silu(feat, p["cls1_w"], p["cls1_bn"])
        c_ = conv3x3_bn_silu(c_, p["cls2_w"], p["cls2_bn"])
        c_ = conv1x1_bias(c_, p["cls3_w"], p["cls3_b"])

        regs.append(jnp.transpose(r, (0, 3, 1, 2)).reshape(B, 4 * reg_max, H * W))
        clss.append(jnp.transpose(c_, (0, 3, 1, 2)).reshape(B, nc, H * W))
    return jnp.concatenate(regs, axis=2), jnp.concatenate(clss, axis=2)


# ----------------------------------------------------------------------------
# Pure-JAX reference (mirrors the PyTorch forward, eval-style BN, training out)
# ----------------------------------------------------------------------------
def _conv_nchw(x, w, padding=0, groups=1):
    return lax.conv_general_dilated(
        x, w, (1, 1), [(padding, padding), (padding, padding)],
        feature_group_count=groups,
        dimension_numbers=("NCHW", "OIHW", "NCHW"),
        precision=lax.Precision.HIGHEST)


def _bn_nchw(x, bn):
    s = (bn["gamma"] / jnp.sqrt(bn["var"] + _BN_EPS))[None, :, None, None]
    return (x - bn["mean"][None, :, None, None]) * s + bn["beta"][None, :, None, None]


def detect_advanced_ref(xs, params, nc, reg_max):
    regs, clss = [], []
    for x, p in zip(xs, params):
        B, C, H, W = x.shape
        # ChannelAttention
        avg = x.mean(axis=(2, 3), keepdims=True)
        mx = x.max(axis=(2, 3), keepdims=True)

        def ca_branch(v):
            return _conv_nchw(jnp.maximum(_conv_nchw(v, p["ca_w1"]), 0.0), p["ca_w2"])

        x = jax.nn.sigmoid(ca_branch(avg) + ca_branch(mx)) * x
        # SpatialAttention
        s_avg = x.mean(axis=1, keepdims=True)
        s_max = x.max(axis=1, keepdims=True)
        sa = jax.nn.sigmoid(_conv_nchw(jnp.concatenate([s_avg, s_max], axis=1),
                                       p["sa_w"], padding=3))
        x = sa * x
        # Refinement: depthwise 3x3 + bias + BN + ReLU
        y = _conv_nchw(x, p["dw_w"], padding=1, groups=C) + p["dw_b"][None, :, None, None]
        x = jnp.maximum(_bn_nchw(y, p["dw_bn"]), 0.0)

        def conv_bn_silu(t, w, bn):
            z = _bn_nchw(_conv_nchw(t, w, padding=1), bn)
            return z * jax.nn.sigmoid(z)

        r = conv_bn_silu(x, p["reg1_w"], p["reg1_bn"])
        r = conv_bn_silu(r, p["reg2_w"], p["reg2_bn"])
        r = _conv_nchw(r, p["reg3_w"]) + p["reg3_b"][None, :, None, None]
        c_ = conv_bn_silu(x, p["cls1_w"], p["cls1_bn"])
        c_ = conv_bn_silu(c_, p["cls2_w"], p["cls2_bn"])
        c_ = _conv_nchw(c_, p["cls3_w"]) + p["cls3_b"][None, :, None, None]

        regs.append(r.reshape(B, 4 * reg_max, H * W))
        clss.append(c_.reshape(B, nc, H * W))
    return jnp.concatenate(regs, axis=2), jnp.concatenate(clss, axis=2)


# ----------------------------------------------------------------------------
# Deterministic synthetic parameters (PyTorch layouts)
# ----------------------------------------------------------------------------
def _init_params(key, C, c2, c3, nc, reg_max):
    ks = list(jax.random.split(key, 40))
    it = iter(ks)

    def w(shape, fan_in):
        return jax.random.normal(next(it), shape, jnp.float32) / jnp.sqrt(fan_in)

    def bnp(n):
        return dict(
            gamma=jax.random.uniform(next(it), (n,), jnp.float32, 0.5, 1.5),
            beta=jax.random.normal(next(it), (n,), jnp.float32) * 0.1,
            mean=jax.random.normal(next(it), (n,), jnp.float32) * 0.1,
            var=jax.random.uniform(next(it), (n,), jnp.float32, 0.5, 1.5))

    cr = max(C // 16, 1)
    return dict(
        ca_w1=w((cr, C, 1, 1), C),
        ca_w2=w((C, cr, 1, 1), cr),
        sa_w=w((1, 2, 7, 7), 2 * 49),
        dw_w=w((C, 1, 3, 3), 9),
        dw_b=jax.random.normal(next(it), (C,), jnp.float32) * 0.1,
        dw_bn=bnp(C),
        reg1_w=w((c2, C, 3, 3), 9 * C), reg1_bn=bnp(c2),
        reg2_w=w((c2, c2, 3, 3), 9 * c2), reg2_bn=bnp(c2),
        reg3_w=w((4 * reg_max, c2, 1, 1), c2),
        reg3_b=jax.random.normal(next(it), (4 * reg_max,), jnp.float32) * 0.1,
        cls1_w=w((c3, C, 3, 3), 9 * C), cls1_bn=bnp(c3),
        cls2_w=w((c3, c3, 3, 3), 9 * c3), cls2_bn=bnp(c3),
        cls3_w=w((nc, c3, 1, 1), c3),
        cls3_b=jax.random.normal(next(it), (nc,), jnp.float32) * 0.1,
    )


if __name__ == "__main__":
    nc, reg_max = 8, 16
    ch = (32, 64)                      # two pyramid levels
    spatial = (16, 8)
    B = 2
    c2 = max(16, ch[0] // 4, reg_max * 4)          # 64
    c3 = max(ch[0], min(nc, 100))                  # 32

    key = jax.random.PRNGKey(0)
    k_in, k_par = jax.random.split(key)
    in_keys = jax.random.split(k_in, len(ch))
    par_keys = jax.random.split(k_par, len(ch))
    xs = [jax.random.normal(in_keys[i], (B, ch[i], spatial[i], spatial[i]),
                            jnp.float32) for i in range(len(ch))]
    params = [_init_params(par_keys[i], ch[i], c2, c3, nc, reg_max)
              for i in range(len(ch))]

    reg_out, cls_out = detect_advanced_pallas(xs, params, nc, reg_max)
    reg_out = jax.block_until_ready(reg_out)
    cls_out = jax.block_until_ready(cls_out)

    reg_ref, cls_ref = detect_advanced_ref(xs, params, nc, reg_max)
    reg_ref = jax.block_until_ready(reg_ref)
    cls_ref = jax.block_until_ready(cls_ref)

    total_hw = sum(s * s for s in spatial)
    assert reg_out.shape == (B, 4 * reg_max, total_hw)
    assert cls_out.shape == (B, nc, total_hw)
    err_r = float(jnp.max(jnp.abs(reg_out - reg_ref)))
    err_c = float(jnp.max(jnp.abs(cls_out - cls_ref)))
    assert err_r < 5e-2 and err_c < 5e-2, (err_r, err_c)
    print("KERNEL_OK")
</pallas_src>

<mosaic_0001>
module attributes {stable_mosaic.version = 11 : i64} {
  func.func @_ca_apply_stats_kernel(%arg0: i32, %arg1: i32, %arg2: memref<1x256x32xf32, #tpu.memory_space<vmem>>, %arg3: memref<1x1x32xf32, #tpu.memory_space<vmem>>, %arg4: memref<1x256x32xf32, #tpu.memory_space<vmem>>, %arg5: memref<1x256x1xf32, #tpu.memory_space<vmem>>, %arg6: memref<1x256x1xf32, #tpu.memory_space<vmem>>) attributes {dimension_semantics = [#tpu.dimension_semantics<parallel>, #tpu.dimension_semantics<parallel>], iteration_bounds = array<i64: 2, 1>, scalar_prefetch = 0 : i64, scratch_operands = 0 : i64, tpu.core_type = #tpu.core_type<tc>, window_params = [{transform_indices = @transform_0, window_bounds = array<i64: 1, 256, 32>}, {transform_indices = @transform_1, window_bounds = array<i64: 1, 1, 32>}, {transform_indices = @transform_2, window_bounds = array<i64: 1, 256, 32>}, {transform_indices = @transform_3, window_bounds = array<i64: 1, 256, 1>}, {transform_indices = @transform_4, window_bounds = array<i64: 1, 256, 1>}]} {
    %c0 = arith.constant 0 : index
    %c0_0 = arith.constant 0 : index
    %c0_1 = arith.constant 0 : index
    %0 = vector.load %arg2[%c0, %c0_0, %c0_1] : memref<1x256x32xf32, #tpu.memory_space<vmem>>, vector<1x256x32xf32>
    %1 = vector.shape_cast %0 : vector<1x256x32xf32> to vector<256x32xf32>
    %c0_2 = arith.constant 0 : index
    %c0_3 = arith.constant 0 : index
    %c0_4 = arith.constant 0 : index
    %2 = vector.load %arg3[%c0_2, %c0_3, %c0_4] : memref<1x1x32xf32, #tpu.memory_space<vmem>>, vector<1x1x32xf32>
    %3 = vector.shape_cast %2 : vector<1x1x32xf32> to vector<1x32xf32>
    %4 = vector.broadcast %3 : vector<1x32xf32> to vector<256x32xf32>
    %5 = arith.mulf %1, %4 : vector<256x32xf32>
    %c0_5 = arith.constant 0 : index
    %c0_6 = arith.constant 0 : index
    %c0_7 = arith.constant 0 : index
    %6 = vector.load %arg4[%c0_5, %c0_6, %c0_7] : memref<1x256x32xf32, #tpu.memory_space<vmem>>, vector<1x256x32xf32>
    %7 = vector.shape_cast %6 : vector<1x256x32xf32> to vector<256x32xf32>
    %8 = vector.shape_cast %5 : vector<256x32xf32> to vector<1x256x32xf32>
    tpu.vector_store %arg4[%c0_5, %c0_6, %c0_7], %8 {strides = array<i32>} : memref<1x256x32xf32, #tpu.memory_space<vmem>>, vector<1x256x32xf32>,
    %cst = arith.constant dense<0.000000e+00> : vector<256xf32>
    %9 = vector.multi_reduction <add>, %5, %cst [1] : vector<256x32xf32> to vector<256xf32>
    %10 = vector.shape_cast %9 : vector<256xf32> to vector<256x1xf32>
    %cst_8 = arith.constant 3.125000e-02 : f32
    %11 = vector.broadcast %cst_8 : f32 to vector<256x1xf32>
    %12 = arith.mulf %10, %11 : vector<256x1xf32>
    %c0_9 = arith.constant 0 : index
    %c0_10 = arith.constant 0 : index
    %c0_11 = arith.constant 0 : index
    %13 = vector.load %arg5[%c0_9, %c0_10, %c0_11] : memref<1x256x1xf32, #tpu.memory_space<vmem>>, vector<1x256x1xf32>
    %14 = vector.shape_cast %13 : vector<1x256x1xf32> to vector<256x1xf32>
    %15 = vector.shape_cast %12 : vector<256x1xf32> to vector<1x256x1xf32>
    tpu.vector_store %arg5[%c0_9, %c0_10, %c0_11], %15 {strides = array<i32>} : memref<1x256x1xf32, #tpu.memory_space<vmem>>, vector<1x256x1xf32>,
    %cst_12 = arith.constant dense<0xFF800000> : vector<256xf32>
    %16 = vector.multi_reduction <maximumf>, %5, %cst_12 [1] : vector<256x32xf32> to vector<256xf32>
    %17 = vector.shape_cast %16 : vector<256xf32> to vector<256x1xf32>
    %c0_13 = arith.constant 0 : index
    %c0_14 = arith.constant 0 : index
    %c0_15 = arith.constant 0 : index
    %18 = vector.load %arg6[%c0_13, %c0_14, %c0_15] : memref<1x256x1xf32, #tpu.memory_space<vmem>>, vector<1x256x1xf32>
    %19 = vector.shape_cast %18 : vector<1x256x1xf32> to vector<256x1xf32>
    %20 = vector.shape_cast %17 : vector<256x1xf32> to vector<1x256x1xf32>
    tpu.vector_store %arg6[%c0_13, %c0_14, %c0_15], %20 {strides = array<i32>} : memref<1x256x1xf32, #tpu.memory_space<vmem>>, vector<1x256x1xf32>,
    return
  }
  func.func @transform_0(%arg0: i32, %arg1: i32) -> (i32, i32, i32) {
    %c0_i32 = arith.constant 0 : i32
    %c0_i32_0 = arith.constant 0 : i32
    return %arg0, %arg1, %c0_i32 : i32, i32, i32
  }
  func.func @transform_1(%arg0: i32, %arg1: i32) -> (i32, i32, i32) {
    %c0_i32 = arith.constant 0 : i32
    %c0_i32_0 = arith.constant 0 : i32
    %c0_i32_1 = arith.constant 0 : i32
    return %arg0, %c0_i32, %c0_i32_0 : i32, i32, i32
  }
  func.func @transform_2(%arg0: i32, %arg1: i32) -> (i32, i32, i32) {
    %c0_i32 = arith.constant 0 : i32
    %c0_i32_0 = arith.constant 0 : i32
    return %arg0, %arg1, %c0_i32 : i32, i32, i32
  }
  func.func @transform_3(%arg0: i32, %arg1: i32) -> (i32, i32, i32) {
    %c0_i32 = arith.constant 0 : i32
    %c0_i32_0 = arith.constant 0 : i32
    return %arg0, %arg1, %c0_i32 : i32, i32, i32
  }
  func.func @transform_4(%arg0: i32, %arg1: i32) -> (i32, i32, i32) {
    %c0_i32 = arith.constant 0 : i32
    %c0_i32_0 = arith.constant 0 : i32
    return %arg0, %arg1, %c0_i32 : i32, i32, i32
  }
}

</mosaic_0001>

<bundles_post_ra>
// kernel: tpu_custom_call.1
= control target key start
LH: loop header
LB: loop body
LE: loop exit
PB: predicated region body
PF: predicated region fallthrough
CT: control target
= control target key end

     0   :  { %s980_s15 = smov 0   ;;  %s982_s16 = smov 0   ;;  %s1614_s0 = inlined_call_operand.vmem [shape: f32[2,256,32], index: 0, kind: input, shape index: {}]   ;;  %s1615_s1 = inlined_call_operand.vmem [shape: f32[2,1,32], index: 1, kind: input, shape index: {}]   ;;  %s1616_s2 = inlined_call_operand.vmem [shape: f32[2,256,32], index: 2, kind: output, shape index: {0}]   ;;  %s1617_s3 = inlined_call_operand.vmem [shape: f32[2,256,1], index: 3, kind: output, shape index: {1}]   ;;  %s1618_s4 = inlined_call_operand.vmem [shape: f32[2,256,1], index: 4, kind: output, shape index: {2}]  }
   0x1   :  { %s984_s17 = smov 0  }
   0x2 LB: > { %s27_s18 = sadd.s32 1, %s949_s16  ;;  %p891_p0 = scmp.ge.s32.totalorder %s953_s17, 1  ;;  %s953_s17 = sphi %s984_s17, %s15_s17   ;;  %s949_s16 = sphi %s982_s16, %s1620_s16   ;;  %s945_s15 = sphi %s980_s15, %s1619_s15  }
   0x3   : > { %p29_p1 = scmp.ge.s32.totalorder %s27_s18, 2  ;;  %p200_p2 = scmp.lt.s32.totalorder %s953_s17, 3 }
   0x5   : > { %s1622_s18 = smov (%p29_p1, %s27_s18), 0  ;;  %p201_p3 = pnand %p891_p0, %p200_p2 }
   0x6   : > { %p256_p4 = scmp.lt.s32.totalorder (!%p201_p3), %s945_s15, 1  ;;  %vm369_vm0 = vcmask (!%p201_p3), 261120   ;;  %vm530_vm1 = vcmask (!%p201_p3), 7168  }
   0x7   : > { %204 = sbr.rel (%p201_p3) target bundleno = 288 (0x120), region = 28 }
   0xe   : > { %s1624_s15 = smov (!%p256_p4, %s945_s15), 1 }
   0xf   : > { %s998_s19 = sshll.u32 %s1624_s15, 8  ;;  %s267_s22 = scalar_lea.vmem %s1615_s1, %s1624_s15 }
  0x10   : > { %s1007_s25 = scalar_lea.vmem %s1614_s0, %s998_s19  ;;  %v1009_v0 = vld [vmem:[%s267_s22] ss:$0 sm:$0xff]  ;;  %s1015_s28 = scalar_lea.vmem %s1616_s2, %s998_s19 }
  0x11   : > { %v300_v1 = vld [vmem:[%s1007_s25 + $0x10] sm:$0xff]  ;;  %v298_v2 = vld [vmem:[%s1007_s25] sm:$0xff]  ;;  %v301_v3 = vld [vmem:[%s1007_s25 + $0x18] sm:$0xff]  ;;  %s1469_s5 = scalar_lea.vmem %s1617_s3, %s998_s19  ;;  %s1535_s8 = scalar_lea.vmem %s1618_s4, %s998_s19 }
  0x12   : > { %v1021_v4 = vmul.f32 %v1009_v0, %v300_v1  ;;  %v1024_v5 = vmul.f32 %v1009_v0, %v298_v2  ;;  %v1027_v6 = vmul.f32 %v1009_v0, %v301_v3  ;;  %v299_v7 = vld [vmem:[%s1007_s25 + $0x8] sm:$0xff]  ;;  %v302_v9 = vld [vmem:[%s1007_s25 + $0x20] sm:$0xff]  ;;  %v305_v13 = vld [vmem:[%s1007_s25 + $0x38] sm:$0xff] }
  0x13   : > { %v303_v8 = vld [vmem:[%s1007_s25 + $0x28] sm:$0xff]  ;;  %v1033_v10 = vmul.f32 %v1009_v0, %v299_v7  ;;  %v1039_v12 = vmul.f32 %v1009_v0, %v302_v9  ;;  %v304_v14 = vld [vmem:[%s1007_s25 + $0x30] sm:$0xff]  ;;  %v1058_v18 = vmul.f32 %v1009_v0, %v305_v13  ;;  %v306_v19 = vld [vmem:[%s1007_s25 + $0x40] sm:$0xff] }
  0x14   : > { %v1036_v11 = vmul.f32 %v1009_v0, %v303_v8  ;;  %v307_v15 = vld [vmem:[%s1007_s25 + $0x48] sm:$0xff]  ;;  %v408_v16 = vsel %vm369_vm0, %v1021_v4, 0.0  ;;  %372 = vst.msk [vmem:[%s1015_s28 + $0x10] sm:$0xff] %vm369_vm0, %v1021_v4  ;;  %v402_v17 = vsel %vm369_vm0, %v1024_v5, 0.0  ;;  %370 = vst.msk [vmem:[%s1015_s28] sm:$0xff] %vm369_vm0, %v1024_v5  ;;  %v309_v20 = vld [vmem:[%s1007_s25 + $0x58] sm:$0xff]  ;;  %v1075_v23 = vmul.f32 %v1009_v0, %v304_v14 }
  0x15   : > { %373 = vst.msk [vmem:[%s1015_s28 + $0x18] sm:$0xff] %vm369_vm0, %v1027_v6  ;;  %v308_v21 = vld [vmem:[%s1007_s25 + $0x50] sm:$0xff]  ;;  %409 = vadd.xlane.f32.xlu1 %v408_v16  ;;  %403 = vadd.xlane.f32.xlu0 %v402_v17  ;;  %v411_v22 = vsel %vm369_vm0, %v1027_v6, 0.0  ;;  %371 = vst.msk [vmem:[%s1015_s28 + $0x8] sm:$0xff] %vm369_vm0, %v1033_v10  ;;  %v311_v24 = vld [vmem:[%s1007_s25 + $0x68] sm:$0xff]  ;;  %v405_v27 = vsel %vm369_vm0, %v1033_v10, 0.0  ;;  %v1086_v28 = vmul.f32 %v1009_v0, %v307_v15 }
  0x16   : > { %375 = vst.msk [vmem:[%s1015_s28 + $0x28] sm:$0xff] %vm369_vm0, %v1036_v11  ;;  %374 = vst.msk [vmem:[%s1015_s28 + $0x20] sm:$0xff] %vm369_vm0, %v1039_v12  ;;  %v310_v25 = vld [vmem:[%s1007_s25 + $0x60] sm:$0xff]  ;;  %v313_v26 = vld [vmem:[%s1007_s25 + $0x78] sm:$0xff]  ;;  %v1089_v29 = vmul.f32 %v1009_v0, %v306_v19  ;;  %v1092_v30 = vmul.f32 %v1009_v0, %v309_v20  ;;  %v1099_v32 = vmul.f32 %v1009_v0, %v308_v21  ;;  %v417_v42 = vsel %vm369_vm0, %v1036_v11, 0.0 }
  0x17   : > { %377 = vst.msk [vmem:[%s1015_s28 + $0x38] sm:$0xff] %vm369_vm0, %v1058_v18  ;;  %v312_v31 = vld [vmem:[%s1007_s25 + $0x70] sm:$0xff]  ;;  %376 = vst.msk [vmem:[%s1015_s28 + $0x30] sm:$0xff] %vm369_vm0, %v1075_v23  ;;  %v1102_v33 = vmul.f32 %v1009_v0, %v311_v24  ;;  %v1105_v34 = vmul.f32 %v1009_v0, %v310_v25  ;;  %v315_v35 = vld [vmem:[%s1007_s25 + $0x88] sm:$0xff]  ;;  %v1120_v38 = vmul.f32 %v1009_v0, %v313_v26  ;;  %v414_v45 = vsel %vm369_vm0, %v1039_v12, 0.0 }
  0x18   : > { %v314_v36 = vld [vmem:[%s1007_s25 + $0x80] sm:$0xff]  ;;  %v317_v37 = vld [vmem:[%s1007_s25 + $0x98] sm:$0xff]  ;;  %379 = vst.msk [vmem:[%s1015_s28 + $0x48] sm:$0xff] %vm369_vm0, %v1086_v28  ;;  %378 = vst.msk [vmem:[%s1015_s28 + $0x40] sm:$0xff] %vm369_vm0, %v1089_v29  ;;  %v1137_v43 = vmul.f32 %v1009_v0, %v312_v31  ;;  %v1146_v46 = vmul.f32 %v1009_v0, %v315_v35  ;;  %v423_v60 = vsel %vm369_vm0, %v1058_v18, 0.0  ;;  %v420_v63 = vsel %vm369_vm0, %v1075_v23, 0.0 }
  0x19   : > { %381 = vst.msk [vmem:[%s1015_s28 + $0x58] sm:$0xff] %vm369_vm0, %v1092_v30  ;;  %v316_v39 = vld [vmem:[%s1007_s25 + $0x90] sm:$0xff]  ;;  %v319_v40 = vld [vmem:[%s1007_s25 + $0xa8] sm:$0xff]  ;;  %v318_v41 = vld [vmem:[%s1007_s25 + $0xa0] sm:$0xff]  ;;  %412 = vadd.xlane.f32.xlu1 %v411_v22  ;;  %406 = vadd.xlane.f32.xlu0 %v405_v27  ;;  %v1149_v47 = vmul.f32 %v1009_v0, %v314_v36  ;;  %v1152_v48 = vmul.f32 %v1009_v0, %v317_v37  ;;  %v429_v15 = vsel %vm369_vm0, %v1086_v28, 0.0  ;;  %v426_v16 = vsel %vm369_vm0, %v1089_v29, 0.0 }
  0x1a   : > { %380 = vst.msk [vmem:[%s1015_s28 + $0x50] sm:$0xff] %vm369_vm0, %v1099_v32  ;;  %383 = vst.msk [vmem:[%s1015_s28 + $0x68] sm:$0xff] %vm369_vm0, %v1102_v33  ;;  %v321_v44 = vld [vmem:[%s1007_s25 + $0xb8] sm:$0xff]  ;;  %v320_v49 = vld [vmem:[%s1007_s25 + $0xb0] sm:$0xff]  ;;  %v1159_v50 = vmul.f32 %v1009_v0, %v316_v39  ;;  %v1162_v51 = vmul.f32 %v1009_v0, %v319_v40  ;;  %v1165_v52 = vmul.f32 %v1009_v0, %v318_v41  ;;  %v435_v19 = vsel %vm369_vm0, %v1092_v30, 0.0 }
  0x1b   : > { %382 = vst.msk [vmem:[%s1015_s28 + $0x60] sm:$0xff] %vm369_vm0, %v1105_v34  ;;  %385 = vst.msk [vmem:[%s1015_s28 + $0x78] sm:$0xff] %vm369_vm0, %v1120_v38  ;;  %v323_v53 = vld [vmem:[%s1007_s25 + $0xc8] sm:$0xff]  ;;  %v322_v54 = vld [vmem:[%s1007_s25 + $0xc0] sm:$0xff]  ;;  %v1180_v56 = vmul.f32 %v1009_v0, %v321_v44  ;;  %v1197_v61 = vmul.f32 %v1009_v0, %v320_v49  ;;  %v1262_v20 = vsel %vm369_vm0, %v1033_v10, -inf  ;;  %v1266_v21 = vsel %vm369_vm0, %v1024_v5, -inf }
  0x1c   : > { %384 = vst.msk [vmem:[%s1015_s28 + $0x70] sm:$0xff] %vm369_vm0, %v1137_v43  ;;  %v325_v55 = vld [vmem:[%s1007_s25 + $0xd8] sm:$0xff]  ;;  %387 = vst.msk [vmem:[%s1015_s28 + $0x88] sm:$0xff] %vm369_vm0, %v1146_v46  ;;  %v324_v57 = vld [vmem:[%s1007_s25 + $0xd0] sm:$0xff]  ;;  %v1206_v1 = vmul.f32 %v1009_v0, %v323_v53  ;;  %v1209_v2 = vmul.f32 %v1009_v0, %v322_v54  ;;  %v1270_v22 = vsel %vm369_vm0, %v1027_v6, -inf  ;;  %v1279_v24 = vsel %vm369_vm0, %v1021_v4, -inf }
  0x1d   : > { %386 = vst.msk [vmem:[%s1015_s28 + $0x80] sm:$0xff] %vm369_vm0, %v1149_v47  ;;  %389 = vst.msk [vmem:[%s1015_s28 + $0x98] sm:$0xff] %vm369_vm0, %v1152_v48  ;;  %v327_v58 = vld [vmem:[%s1007_s25 + $0xe8] sm:$0xff]  ;;  %v326_v59 = vld [vmem:[%s1007_s25 + $0xe0] sm:$0xff]  ;;  %418 = vadd.xlane.f32.xlu1 %v417_v42  ;;  %415 = vadd.xlane.f32.xlu0 %v414_v45  ;;  %v1212_v3 = vmul.f32 %v1009_v0, %v325_v55  ;;  %v1219_v8 = vmul.f32 %v1009_v0, %v324_v57  ;;  %v1283_v10 = vsel %vm369_vm0, %v1036_v11, -inf }
  0x1e   : > { %388 = vst.msk [vmem:[%s1015_s28 + $0x90] sm:$0xff] %vm369_vm0, %v1159_v50  ;;  %391 = vst.msk [vmem:[%s1015_s28 + $0xa8] sm:$0xff] %vm369_vm0, %v1162_v51  ;;  %v329_v62 = vld [vmem:[%s1007_s25 + $0xf8] sm:$0xff]  ;;  %v328_v7 = vld [vmem:[%s1007_s25 + $0xf0] sm:$0xff]  ;;  %v1222_v9 = vmul.f32 %v1009_v0, %v327_v58  ;;  %v1225_v13 = vmul.f32 %v1009_v0, %v326_v59  ;;  %v1287_v5 = vsel %vm369_vm0, %v1039_v12, -inf  ;;  %v1291_v6 = vsel %vm369_vm0, %v1058_v18, -inf }
  0x1f   : > { %390 = vst.msk [vmem:[%s1015_s28 + $0xa0] sm:$0xff] %vm369_vm0, %v1165_v52  ;;  %393 = vst.msk [vmem:[%s1015_s28 + $0xb8] sm:$0xff] %vm369_vm0, %v1180_v56  ;;  %v1237_v14 = vmul.f32 %v1009_v0, %v329_v62  ;;  %v1253_v17 = vmul.f32 %v1009_v0, %v328_v7  ;;  %v432_v0 = vsel %vm369_vm0, %v1099_v32, 0.0  ;;  %v1295_v25 = vsel %vm369_vm0, %v1075_v23, -inf }
  0x20   : > { %392 = vst.msk [vmem:[%s1015_s28 + $0xb0] sm:$0xff] %vm369_vm0, %v1197_v61  ;;  %395 = vst.msk [vmem:[%s1015_s28 + $0xc8] sm:$0xff] %vm369_vm0, %v1206_v1  ;;  %v1299_v4 = vsel %vm369_vm0, %v1086_v28, -inf  ;;  %v1303_v11 = vsel %vm369_vm0, %v1089_v29, -inf  ;;  %v1307_v12 = vsel %vm369_vm0, %v1092_v30, -inf  ;;  %v1311_v18 = vsel %vm369_vm0, %v1099_v32, -inf }
  0x21   : > { %394 = vst.msk [vmem:[%s1015_s28 + $0xc0] sm:$0xff] %vm369_vm0, %v1209_v2  ;;  %397 = vst.msk [vmem:[%s1015_s28 + $0xd8] sm:$0xff] %vm369_vm0, %v1212_v3  ;;  %424 = vadd.xlane.f32.xlu1 %v423_v60  ;;  %421 = vadd.xlane.f32.xlu0 %v420_v63  ;;  %v1315_v23 = vsel %vm369_vm0, %v1102_v33, -inf  ;;  %v1319_v26 = vsel %vm369_vm0, %v1105_v34, -inf  ;;  %v1323_v27 = vsel %vm369_vm0, %v1120_v38, -inf  ;;  %v1327_v28 = vsel %vm369_vm0, %v1137_v43, -inf }
  0x22   : > { %396 = vst.msk [vmem:[%s1015_s28 + $0xd0] sm:$0xff] %vm369_vm0, %v1219_v8  ;;  %399 = vst.msk [vmem:[%s1015_s28 + $0xe8] sm:$0xff] %vm369_vm0, %v1222_v9  ;;  %v1331_v29 = vsel %vm369_vm0, %v1146_v46, -inf  ;;  %v1335_v30 = vsel %vm369_vm0, %v1149_v47, -inf  ;;  %v1339_v31 = vsel %vm369_vm0, %v1152_v48, -inf  ;;  %v1343_v32 = vsel %vm369_vm0, %v1159_v50, -inf }
  0x23   : > { %398 = vst.msk [vmem:[%s1015_s28 + $0xe0] sm:$0xff] %vm369_vm0, %v1225_v13  ;;  %401 = vst.msk [vmem:[%s1015_s28 + $0xf8] sm:$0xff] %vm369_vm0, %v1237_v14  ;;  %v1347_v35 = vsel %vm369_vm0, %v1162_v51, -inf  ;;  %v1351_v36 = vsel %vm369_vm0, %v1165_v52, -inf  ;;  %v1355_v37 = vsel %vm369_vm0, %v1180_v56, -inf  ;;  %v1359_v39 = vsel %vm369_vm0, %v1197_v61, -inf }
  0x24   : > { %400 = vst.msk [vmem:[%s1015_s28 + $0xf0] sm:$0xff] %vm369_vm0, %v1253_v17  ;;  %v1363_v40 = vsel %vm369_vm0, %v1206_v1, -inf  ;;  %v1367_v41 = vsel %vm369_vm0, %v1209_v2, -inf  ;;  %v1371_v42 = vsel %vm369_vm0, %v1212_v3, -inf  ;;  %v1375_v44 = vsel %vm369_vm0, %v1219_v8, -inf }
  0x25   : > { %430 = vadd.xlane.f32.xlu1 %v429_v15  ;;  %427 = vadd.xlane.f32.xlu0 %v426_v16  ;;  %v1379_v45 = vsel %vm369_vm0, %v1222_v9, -inf  ;;  %v1383_v49 = vsel %vm369_vm0, %v1225_v13, -inf  ;;  %v441_v53 = vsel %vm369_vm0, %v1102_v33, 0.0  ;;  %v438_v54 = vsel %vm369_vm0, %v1105_v34, 0.0 }
  0x26   : > { %v1391_v55 = vsel %vm369_vm0, %v1237_v14, -inf  ;;  %v1395_v57 = vsel %vm369_vm0, %v1253_v17, -inf  ;;  %v447_v58 = vsel %vm369_vm0, %v1120_v38, 0.0  ;;  %v444_v59 = vsel %vm369_vm0, %v1137_v43, 0.0 }
  0x27   : > { %v453_v33 = vsel %vm369_vm0, %v1146_v46, 0.0  ;;  %v450_v34 = vsel %vm369_vm0, %v1149_v47, 0.0  ;;  %v459_v60 = vsel %vm369_vm0, %v1152_v48, 0.0  ;;  %v456_v62 = vsel %vm369_vm0, %v1159_v50, 0.0 }
  0x28   : > { %v465_v38 = vsel %vm369_vm0, %v1162_v51, 0.0  ;;  %v462_v43 = vsel %vm369_vm0, %v1165_v52, 0.0  ;;  %v471_v46 = vsel %vm369_vm0, %v1180_v56, 0.0  ;;  %v468_v47 = vsel %vm369_vm0, %v1197_v61, 0.0 }
  0x29   : > { %436 = vadd.xlane.f32.xlu1 %v435_v19  ;;  %433 = vadd.xlane.f32.xlu0 %v432_v0  ;;  %v477_v48 = vsel %vm369_vm0, %v1206_v1, 0.0  ;;  %v474_v50 = vsel %vm369_vm0, %v1209_v2, 0.0  ;;  %v483_v51 = vsel %vm369_vm0, %v1212_v3, 0.0  ;;  %v480_v52 = vsel %vm369_vm0, %v1219_v8, 0.0 }
  0x2a   : > { %v489_v56 = vsel %vm369_vm0, %v1222_v9, 0.0  ;;  %v486_v61 = vsel %vm369_vm0, %v1225_v13, 0.0  ;;  %v495_v63 = vsel %vm369_vm0, %v1237_v14, 0.0  ;;  %v492_v1 = vsel %vm369_vm0, %v1253_v17, 0.0 }
  0x2d   : > { %442 = vadd.xlane.f32.xlu1 %v441_v53  ;;  %439 = vadd.xlane.f32.xlu0 %v438_v54 }
  0x31   : > { %448 = vadd.xlane.f32.xlu1 %v447_v58  ;;  %445 = vadd.xlane.f32.xlu0 %v444_v59 }
  0x35   : > { %454 = vadd.xlane.f32.xlu1 %v453_v33  ;;  %451 = vadd.xlane.f32.xlu0 %v450_v34 }
  0x39   : > { %460 = vadd.xlane.f32.xlu1 %v459_v60  ;;  %457 = vadd.xlane.f32.xlu0 %v456_v62 }
  0x3d   : > { %466 = vadd.xlane.f32.xlu1 %v465_v38  ;;  %463 = vadd.xlane.f32.xlu0 %v462_v43 }
  0x41   : > { %472 = vadd.xlane.f32.xlu1 %v471_v46  ;;  %469 = vadd.xlane.f32.xlu0 %v468_v47 }
  0x45   : > { %478 = vadd.xlane.f32.xlu1 %v477_v48  ;;  %475 = vadd.xlane.f32.xlu0 %v474_v50 }
  0x49   : > { %484 = vadd.xlane.f32.xlu1 %v483_v51  ;;  %481 = vadd.xlane.f32.xlu0 %v480_v52 }
  0x4d   : > { %490 = vadd.xlane.f32.xlu1 %v489_v56  ;;  %487 = vadd.xlane.f32.xlu0 %v486_v61 }
  0x51   : > { %496 = vadd.xlane.f32.xlu1 %v495_v63  ;;  %493 = vadd.xlane.f32.xlu0 %v492_v1 }
  0x55   : > { %567 = vmax.xlane.f32.xlu1 %v1262_v20  ;;  %564 = vmax.xlane.f32.xlu0 %v1266_v21 }
  0x59   : > { %573 = vmax.xlane.f32.xlu1 %v1270_v22  ;;  %570 = vmax.xlane.f32.xlu0 %v1279_v24 }
  0x5d   : > { %579 = vmax.xlane.f32.xlu1 %v1283_v10  ;;  %576 = vmax.xlane.f32.xlu0 %v1287_v5 }
  0x61   : > { %585 = vmax.xlane.f32.xlu1 %v1291_v6  ;;  %582 = vmax.xlane.f32.xlu0 %v1295_v25 }
  0x65   : > { %591 = vmax.xlane.f32.xlu1 %v1299_v4  ;;  %588 = vmax.xlane.f32.xlu0 %v1303_v11 }
  0x69   : > { %597 = vmax.xlane.f32.xlu1 %v1307_v12  ;;  %594 = vmax.xlane.f32.xlu0 %v1311_v18 }
  0x6d   : > { %603 = vmax.xlane.f32.xlu1 %v1315_v23  ;;  %600 = vmax.xlane.f32.xlu0 %v1319_v26 }
  0x71   : > { %609 = vmax.xlane.f32.xlu1 %v1323_v27  ;;  %606 = vmax.xlane.f32.xlu0 %v1327_v28 }
  0x75   : > { %615 = vmax.xlane.f32.xlu1 %v1331_v29  ;;  %612 = vmax.xlane.f32.xlu0 %v1335_v30 }
  0x79   : > { %621 = vmax.xlane.f32.xlu1 %v1339_v31  ;;  %618 = vmax.xlane.f32.xlu0 %v1343_v32 }
  0x7d   : > { %627 = vmax.xlane.f32.xlu1 %v1347_v35  ;;  %624 = vmax.xlane.f32.xlu0 %v1351_v36 }
  0x81   : > { %633 = vmax.xlane.f32.xlu1 %v1355_v37  ;;  %630 = vmax.xlane.f32.xlu0 %v1359_v39 }
  0x85   : > { %639 = vmax.xlane.f32.xlu1 %v1363_v40  ;;  %636 = vmax.xlane.f32.xlu0 %v1367_v41 }
  0x89   : > { %645 = vmax.xlane.f32.xlu1 %v1371_v42  ;;  %642 = vmax.xlane.f32.xlu0 %v1375_v44 }
  0x8d   : > { %651 = vmax.xlane.f32.xlu1 %v1379_v45  ;;  %648 = vmax.xlane.f32.xlu0 %v1383_v49 }
  0x91   : > { %657 = vmax.xlane.f32.xlu1 %v1391_v55  ;;  %654 = vmax.xlane.f32.xlu0 %v1395_v57 }
  0xa2   : > { %v410_v2 = vpop.xlane.xlu1 %409  ;;  %v404_v3 = vpop.xlane.xlu0 %403 }
  0xa3   : > { %v500_v7 = vmul.f32 0.03125, %v410_v2  ;;  %v498_v8 = vmul.f32 0.03125, %v404_v3 }
  0xa5   : > { %533 = vst.msk [vmem:[%s1469_s5 + $0x10] sm:$0xff] %vm530_vm1, %v500_v7  ;;  %531 = vst.msk [vmem:[%s1469_s5] sm:$0xff] %vm530_vm1, %v498_v8 }
  0xa6   : > { %v413_v9 = vpop.xlane.xlu1 %412  ;;  %v407_v13 = vpop.xlane.xlu0 %406 }
  0xa7   : > { %v501_v14 = vmul.f32 0.03125, %v413_v9  ;;  %v499_v15 = vmul.f32 0.03125, %v407_v13 }
  0xa9   : > { %534 = vst.msk [vmem:[%s1469_s5 + $0x18] sm:$0xff] %vm530_vm1, %v501_v14  ;;  %532 = vst.msk [vmem:[%s1469_s5 + $0x8] sm:$0xff] %vm530_vm1, %v499_v15 }
  0xaa   : > { %v419_v16 = vpop.xlane.xlu1 %418  ;;  %v416_v17 = vpop.xlane.xlu0 %415 }
  0xab   : > { %v503_v19 = vmul.f32 0.03125, %v419_v16  ;;  %v502_v20 = vmul.f32 0.03125, %v416_v17 }
  0xad   : > { %536 = vst.msk [vmem:[%s1469_s5 + $0x28] sm:$0xff] %vm530_vm1, %v503_v19  ;;  %535 = vst.msk [vmem:[%s1469_s5 + $0x20] sm:$0xff] %vm530_vm1, %v502_v20 }
  0xae   : > { %v425_v21 = vpop.xlane.xlu1 %424  ;;  %v422_v22 = vpop.xlane.xlu0 %421 }
  0xaf   : > { %v505_v0 = vmul.f32 0.03125, %v425_v21  ;;  %v504_v24 = vmul.f32 0.03125, %v422_v22 }
  0xb1   : > { %538 = vst.msk [vmem:[%s1469_s5 + $0x38] sm:$0xff] %vm530_vm1, %v505_v0  ;;  %537 = vst.msk [vmem:[%s1469_s5 + $0x30] sm:$0xff] %vm530_vm1, %v504_v24 }
  0xb2   : > { %v431_v10 = vpop.xlane.xlu1 %430  ;;  %v428_v5 = vpop.xlane.xlu0 %427 }
  0xb3   : > { %v507_v6 = vmul.f32 0.03125, %v431_v10  ;;  %v506_v25 = vmul.f32 0.03125, %v428_v5 }
  0xb5   : > { %540 = vst.msk [vmem:[%s1469_s5 + $0x48] sm:$0xff] %vm530_vm1, %v507_v6  ;;  %539 = vst.msk [vmem:[%s1469_s5 + $0x40] sm:$0xff] %vm530_vm1, %v506_v25 }
  0xb6   : > { %v437_v4 = vpop.xlane.xlu1 %436  ;;  %v434_v11 = vpop.xlane.xlu0 %433 }
  0xb7   : > { %v509_v12 = vmul.f32 0.03125, %v437_v4  ;;  %v508_v18 = vmul.f32 0.03125, %v434_v11 }
  0xb9   : > { %542 = vst.msk [vmem:[%s1469_s5 + $0x58] sm:$0xff] %vm530_vm1, %v509_v12  ;;  %541 = vst.msk [vmem:[%s1469_s5 + $0x50] sm:$0xff] %vm530_vm1, %v508_v18 }
  0xba   : > { %v443_v23 = vpop.xlane.xlu1 %442  ;;  %v440_v26 = vpop.xlane.xlu0 %439 }
  0xbb   : > { %v511_v27 = vmul.f32 0.03125, %v443_v23  ;;  %v510_v28 = vmul.f32 0.03125, %v440_v26 }
  0xbd   : > { %544 = vst.msk [vmem:[%s1469_s5 + $0x68] sm:$0xff] %vm530_vm1, %v511_v27  ;;  %543 = vst.msk [vmem:[%s1469_s5 + $0x60] sm:$0xff] %vm530_vm1, %v510_v28 }
  0xbe   : > { %v449_v29 = vpop.xlane.xlu1 %448  ;;  %v446_v30 = vpop.xlane.xlu0 %445 }
  0xbf   : > { %v513_v31 = vmul.f32 0.03125, %v449_v29  ;;  %v512_v32 = vmul.f32 0.03125, %v446_v30 }
  0xc1   : > { %546 = vst.msk [vmem:[%s1469_s5 + $0x78] sm:$0xff] %vm530_vm1, %v513_v31  ;;  %545 = vst.msk [vmem:[%s1469_s5 + $0x70] sm:$0xff] %vm530_vm1, %v512_v32 }
  0xc2   : > { %v455_v35 = vpop.xlane.xlu1 %454  ;;  %v452_v36 = vpop.xlane.xlu0 %451 }
  0xc3   : > { %v515_v37 = vmul.f32 0.03125, %v455_v35  ;;  %v514_v39 = vmul.f32 0.03125, %v452_v36 }
  0xc5   : > { %548 = vst.msk [vmem:[%s1469_s5 + $0x88] sm:$0xff] %vm530_vm1, %v515_v37  ;;  %547 = vst.msk [vmem:[%s1469_s5 + $0x80] sm:$0xff] %vm530_vm1, %v514_v39 }
  0xc6   : > { %v461_v40 = vpop.xlane.xlu1 %460  ;;  %v458_v41 = vpop.xlane.xlu0 %457 }
  0xc7   : > { %v517_v42 = vmul.f32 0.03125, %v461_v40  ;;  %v516_v44 = vmul.f32 0.03125, %v458_v41 }
  0xc9   : > { %550 = vst.msk [vmem:[%s1469_s5 + $0x98] sm:$0xff] %vm530_vm1, %v517_v42  ;;  %549 = vst.msk [vmem:[%s1469_s5 + $0x90] sm:$0xff] %vm530_vm1, %v516_v44 }
  0xca   : > { %v467_v45 = vpop.xlane.xlu1 %466  ;;  %v464_v49 = vpop.xlane.xlu0 %463 }
  0xcb   : > { %v519_v53 = vmul.f32 0.03125, %v467_v45  ;;  %v518_v54 = vmul.f32 0.03125, %v464_v49 }
  0xcd   : > { %552 = vst.msk [vmem:[%s1469_s5 + $0xa8] sm:$0xff] %vm530_vm1, %v519_v53  ;;  %551 = vst.msk [vmem:[%s1469_s5 + $0xa0] sm:$0xff] %vm530_vm1, %v518_v54 }
  0xce   : > { %v473_v55 = vpop.xlane.xlu1 %472  ;;  %v470_v57 = vpop.xlane.xlu0 %469 }
  0xcf   : > { %v521_v58 = vmul.f32 0.03125, %v473_v55  ;;  %v520_v59 = vmul.f32 0.03125, %v470_v57 }
  0xd1   : > { %554 = vst.msk [vmem:[%s1469_s5 + $0xb8] sm:$0xff] %vm530_vm1, %v521_v58  ;;  %553 = vst.msk [vmem:[%s1469_s5 + $0xb0] sm:$0xff] %vm530_vm1, %v520_v59 }
  0xd2   : > { %v479_v33 = vpop.xlane.xlu1 %478  ;;  %v476_v34 = vpop.xlane.xlu0 %475 }
  0xd3   : > { %v523_v60 = vmul.f32 0.03125, %v479_v33  ;;  %v522_v62 = vmul.f32 0.03125, %v476_v34 }
  0xd5   : > { %556 = vst.msk [vmem:[%s1469_s5 + $0xc8] sm:$0xff] %vm530_vm1, %v523_v60  ;;  %555 = vst.msk [vmem:[%s1469_s5 + $0xc0] sm:$0xff] %vm530_vm1, %v522_v62 }
  0xd6   : > { %v485_v38 = vpop.xlane.xlu1 %484  ;;  %v482_v43 = vpop.xlane.xlu0 %481 }
  0xd7   : > { %v525_v46 = vmul.f32 0.03125, %v485_v38  ;;  %v524_v47 = vmul.f32 0.03125, %v482_v43 }
  0xd9   : > { %558 = vst.msk [vmem:[%s1469_s5 + $0xd8] sm:$0xff] %vm530_vm1, %v525_v46  ;;  %557 = vst.msk [vmem:[%s1469_s5 + $0xd0] sm:$0xff] %vm530_vm1, %v524_v47 }
  0xda   : > { %v491_v48 = vpop.xlane.xlu1 %490  ;;  %v488_v50 = vpop.xlane.xlu0 %487 }
  0xdb   : > { %v527_v51 = vmul.f32 0.03125, %v491_v48  ;;  %v526_v52 = vmul.f32 0.03125, %v488_v50 }
  0xdd   : > { %560 = vst.msk [vmem:[%s1469_s5 + $0xe8] sm:$0xff] %vm530_vm1, %v527_v51  ;;  %559 = vst.msk [vmem:[%s1469_s5 + $0xe0] sm:$0xff] %vm530_vm1, %v526_v52 }
  0xde   : > { %v497_v56 = vpop.xlane.xlu1 %496  ;;  %v494_v61 = vpop.xlane.xlu0 %493 }
  0xdf   : > { %v529_v63 = vmul.f32 0.03125, %v497_v56  ;;  %v528_v1 = vmul.f32 0.03125, %v494_v61 }
  0xe1   : > { %562 = vst.msk [vmem:[%s1469_s5 + $0xf8] sm:$0xff] %vm530_vm1, %v529_v63  ;;  %561 = vst.msk [vmem:[%s1469_s5 + $0xf0] sm:$0xff] %vm530_vm1, %v528_v1 }
  0xe2   : > { %v568_v2 = vpop.xlane.xlu1 %567  ;;  %v565_v3 = vpop.xlane.xlu0 %564 }
  0xe3   : > { %660 = vst.msk [vmem:[%s1535_s8 + $0x8] sm:$0xff] %vm530_vm1, %v568_v2  ;;  %659 = vst.msk [vmem:[%s1535_s8] sm:$0xff] %vm530_vm1, %v565_v3 }
  0xe6   : > { %v574_v7 = vpop.xlane.xlu1 %573  ;;  %v571_v8 = vpop.xlane.xlu0 %570 }
  0xe7   : > { %662 = vst.msk [vmem:[%s1535_s8 + $0x18] sm:$0xff] %vm530_vm1, %v574_v7  ;;  %661 = vst.msk [vmem:[%s1535_s8 + $0x10] sm:$0xff] %vm530_vm1, %v571_v8 }
  0xea   : > { %v580_v9 = vpop.xlane.xlu1 %579  ;;  %v577_v13 = vpop.xlane.xlu0 %576 }
  0xeb   : > { %664 = vst.msk [vmem:[%s1535_s8 + $0x28] sm:$0xff] %vm530_vm1, %v580_v9  ;;  %663 = vst.msk [vmem:[%s1535_s8 + $0x20] sm:$0xff] %vm530_vm1, %v577_v13 }
  0xee   : > { %v586_v14 = vpop.xlane.xlu1 %585  ;;  %v583_v15 = vpop.xlane.xlu0 %582 }
  0xef   : > { %666 = vst.msk [vmem:[%s1535_s8 + $0x38] sm:$0xff] %vm530_vm1, %v586_v14  ;;  %665 = vst.msk [vmem:[%s1535_s8 + $0x30] sm:$0xff] %vm530_vm1, %v583_v15 }
  0xf2   : > { %v592_v16 = vpop.xlane.xlu1 %591  ;;  %v589_v17 = vpop.xlane.xlu0 %588 }
  0xf3   : > { %668 = vst.msk [vmem:[%s1535_s8 + $0x48] sm:$0xff] %vm530_vm1, %v592_v16  ;;  %667 = vst.msk [vmem:[%s1535_s8 + $0x40] sm:$0xff] %vm530_vm1, %v589_v17 }
  0xf6   : > { %v598_v19 = vpop.xlane.xlu1 %597  ;;  %v595_v20 = vpop.xlane.xlu0 %594 }
  0xf7   : > { %670 = vst.msk [vmem:[%s1535_s8 + $0x58] sm:$0xff] %vm530_vm1, %v598_v19  ;;  %669 = vst.msk [vmem:[%s1535_s8 + $0x50] sm:$0xff] %vm530_vm1, %v595_v20 }
  0xfa   : > { %v604_v21 = vpop.xlane.xlu1 %603  ;;  %v601_v22 = vpop.xlane.xlu0 %600 }
  0xfb   : > { %672 = vst.msk [vmem:[%s1535_s8 + $0x68] sm:$0xff] %vm530_vm1, %v604_v21  ;;  %671 = vst.msk [vmem:[%s1535_s8 + $0x60] sm:$0xff] %vm530_vm1, %v601_v22 }
  0xfe   : > { %v610_v0 = vpop.xlane.xlu1 %609  ;;  %v607_v24 = vpop.xlane.xlu0 %606 }
  0xff   : > { %674 = vst.msk [vmem:[%s1535_s8 + $0x78] sm:$0xff] %vm530_vm1, %v610_v0  ;;  %673 = vst.msk [vmem:[%s1535_s8 + $0x70] sm:$0xff] %vm530_vm1, %v607_v24 }
 0x102   : > { %v616_v10 = vpop.xlane.xlu1 %615  ;;  %v613_v5 = vpop.xlane.xlu0 %612 }
 0x103   : > { %676 = vst.msk [vmem:[%s1535_s8 + $0x88] sm:$0xff] %vm530_vm1, %v616_v10  ;;  %675 = vst.msk [vmem:[%s1535_s8 + $0x80] sm:$0xff] %vm530_vm1, %v613_v5 }
 0x106   : > { %v622_v6 = vpop.xlane.xlu1 %621  ;;  %v619_v25 = vpop.xlane.xlu0 %618 }
 0x107   : > { %678 = vst.msk [vmem:[%s1535_s8 + $0x98] sm:$0xff] %vm530_vm1, %v622_v6  ;;  %677 = vst.msk [vmem:[%s1535_s8 + $0x90] sm:$0xff] %vm530_vm1, %v619_v25 }
 0x10a   : > { %v628_v4 = vpop.xlane.xlu1 %627  ;;  %v625_v11 = vpop.xlane.xlu0 %624 }
 0x10b   : > { %680 = vst.msk [vmem:[%s1535_s8 + $0xa8] sm:$0xff] %vm530_vm1, %v628_v4  ;;  %679 = vst.msk [vmem:[%s1535_s8 + $0xa0] sm:$0xff] %vm530_vm1, %v625_v11 }
 0x10e   : > { %v634_v12 = vpop.xlane.xlu1 %633  ;;  %v631_v18 = vpop.xlane.xlu0 %630 }
 0x10f   : > { %682 = vst.msk [vmem:[%s1535_s8 + $0xb8] sm:$0xff] %vm530_vm1, %v634_v12  ;;  %681 = vst.msk [vmem:[%s1535_s8 + $0xb0] sm:$0xff] %vm530_vm1, %v631_v18 }
 0x112   : > { %v640_v23 = vpop.xlane.xlu1 %639  ;;  %v637_v26 = vpop.xlane.xlu0 %636 }
 0x113   : > { %684 = vst.msk [vmem:[%s1535_s8 + $0xc8] sm:$0xff] %vm530_vm1, %v640_v23  ;;  %683 = vst.msk [vmem:[%s1535_s8 + $0xc0] sm:$0xff] %vm530_vm1, %v637_v26 }
 0x116   : > { %v646_v27 = vpop.xlane.xlu1 %645  ;;  %v643_v28 = vpop.xlane.xlu0 %642 }
 0x117   : > { %686 = vst.msk [vmem:[%s1535_s8 + $0xd8] sm:$0xff] %vm530_vm1, %v646_v27  ;;  %685 = vst.msk [vmem:[%s1535_s8 + $0xd0] sm:$0xff] %vm530_vm1, %v643_v28 }
 0x11a   : > { %v652_v29 = vpop.xlane.xlu1 %651  ;;  %v649_v30 = vpop.xlane.xlu0 %648 }
 0x11b   : > { %688 = vst.msk [vmem:[%s1535_s8 + $0xe8] sm:$0xff] %vm530_vm1, %v652_v29  ;;  %687 = vst.msk [vmem:[%s1535_s8 + $0xe0] sm:$0xff] %vm530_vm1, %v649_v30 }
 0x11e   : > { %v658_v31 = vpop.xlane.xlu1 %657  ;;  %v655_v32 = vpop.xlane.xlu0 %654 }
 0x11f   : > { %690 = vst.msk [vmem:[%s1535_s8 + $0xf8] sm:$0xff] %vm530_vm1, %v658_v31  ;;  %689 = vst.msk [vmem:[%s1535_s8 + $0xf0] sm:$0xff] %vm530_vm1, %v655_v32 }
 0x120 PF: > { %s15_s17 = sadd.s32 1, %s953_s17   ;;  %s1619_s15 = smov %s949_s16 }
 0x121   : > { %p12_p5 = scmp.ge.s32.totalorder %s15_s17, 4   ;;  %s1620_s16 = smov %s1622_s18 }
 0x123   :  { %14 = sbr.rel (!%p12_p5) target bundleno = 2 (0x2), region = 85 }

</bundles_post_ra>
